<compile_context>
chip_gen: v6e
topology: v6e:2x2x1
jax: 0.10.0
libtpu: 0.0.40
codegen_flags: <defaults>
</compile_context>

<pallas_src>
import functools

import jax
import jax.numpy as jnp
from jax.experimental import pallas as pl
from jax.experimental.pallas import tpu as pltpu


def _round_up(x, m):
    return ((x + m - 1) // m) * m


def _gem_kernel(p_ref, x_ref, o_ref, *, eps, hw):
    """One grid step: GeM-pool a (block_rows, HW) row tile.

    p_ref : SMEM scalar-prefetch ref, shape (1,), float32 (learnable p)
    x_ref : (block_rows, HW) VMEM tile
    o_ref : (block_rows, 1)  VMEM tile
    """
    p = p_ref[0]
    inv_p = 1.0 / p                                   # hoisted scalar reciprocal

    x = x_ref[...].astype(jnp.float32)
    x = jnp.maximum(x, jnp.float32(eps))              # clamp(min=eps)  -> x > 0
    # x ** p  (x > 0 guaranteed by the clamp, so exp/log matches pow exactly).
    # EUP path: 2 transcendentals per element; f32 kept for reference-level
    # accuracy (a bf16 log/exp path is possible on v6e/v7x if tolerance allows).
    xp = jnp.exp(p * jnp.log(x))
    # avg_pool2d over the full spatial extent == mean over the lane axis (XLU).
    m = jnp.sum(xp, axis=-1, keepdims=True) * jnp.float32(1.0 / hw)
    # m ** (1/p)  -- tiny per-row epilogue (block_rows elements only).
    y = jnp.exp(jnp.log(m) * inv_p)
    o_ref[...] = y.astype(o_ref.dtype)


def _choose_block_rows(nc, hw, itemsize):
    """Row-tile size: target ~4 MiB input tiles (near-roofline DMA, amortized
    per-step overhead), bounded so double-buffered inputs stay within ~24 MiB
    of VMEM on every generation (incl. v7x's 64 MiB physical), and keep ~8+
    grid steps when possible for pipelining / v7x megacore sharding -- without
    ever shrinking tiles below ~512 KiB to do so."""
    if nc <= 8:
        return nc                                      # full row extent (valid block)
    hw_lanes = _round_up(hw, 128)                      # lane padding inside VMEM
    row_bytes = hw_lanes * itemsize
    vmem_rows = max(8, (24 * 1024 * 1024) // (2 * row_bytes))   # 2x-buffered budget
    target_rows = max(8, (4 * 1024 * 1024) // row_bytes)        # ~4 MiB tiles
    floor_rows = max(8, (512 * 1024) // row_bytes)               # never below 512 KiB
    steps_rows = _round_up(max(pl.cdiv(nc, 8), 1), 8)            # keep >= ~8 steps
    br = min(vmem_rows, target_rows, max(steps_rows, floor_rows))
    br = min(br, _round_up(nc, 8))                     # never exceed row extent
    return max(8, (br // 8) * 8)                       # multiple of 8 sublanes


def gem_pool(x, p, eps=1e-6, block_rows=None):
    """GeM pooling. x: (N, C, H, W). p: (1,) float32 parameter. Returns (N, C, 1, 1)."""
    N, C, H, W = x.shape
    NC, HW = N * C, H * W
    xf = x.reshape(NC, HW)                             # pure reshape, no copy

    itemsize = jnp.dtype(x.dtype).itemsize
    if block_rows is None:
        block_rows = _choose_block_rows(NC, HW, itemsize)

    grid = (pl.cdiv(NC, block_rows),)
    kernel = functools.partial(_gem_kernel, eps=eps, hw=float(HW))

    # Advisory cost: 2 transcendentals (log+exp) per element + per-row epilogue.
    cost = pl.CostEstimate(
        flops=3 * NC * HW,
        transcendentals=2 * NC * HW + 2 * NC,
        bytes_accessed=NC * HW * itemsize + NC * itemsize + 4,
    )

    out = pl.pallas_call(
        kernel,
        out_shape=jax.ShapeDtypeStruct((NC, 1), x.dtype),
        grid_spec=pltpu.PrefetchScalarGridSpec(
            num_scalar_prefetch=1,          # p lands in SMEM, passed first to kernel
            grid=grid,
            in_specs=[
                pl.BlockSpec((block_rows, HW), lambda i, p_ref: (i, 0)),
            ],
            out_specs=pl.BlockSpec((block_rows, 1), lambda i, p_ref: (i, 0)),
        ),
        compiler_params=pltpu.CompilerParams(
            dimension_semantics=("parallel",),
            # Raise the scoped VMEM limit so the large double-buffered tiles
            # are accepted on v5e (16 MiB default) while staying well under
            # v7x's 64 MiB physical VMEM.
            vmem_limit_bytes=48 * 1024 * 1024,
        ),
        cost_estimate=cost,
    )(p, xf)

    return out.reshape(N, C, 1, 1)


def gem_ref(x, p, eps=1e-6):
    """Pure-JAX reference matching the PyTorch forward."""
    xc = jnp.maximum(x, eps) ** p[0]
    m = jnp.mean(xc, axis=(-2, -1), keepdims=True)
    return m ** (1.0 / p[0])


if __name__ == "__main__":
    key = jax.random.PRNGKey(0)
    N, C, H, W = 2, 4, 16, 16
    x = jax.random.normal(key, (N, C, H, W), dtype=jnp.float32)

    # Deterministic parameter init, mirroring nn.Parameter(torch.ones(1) * 3)
    p = jnp.ones((1,), dtype=jnp.float32) * 3.0
    eps = 1e-6

    y = gem_pool(x, p, eps=eps)
    y = jax.block_until_ready(y)

    y_ref = gem_ref(x, p, eps=eps)
    assert y.shape == (N, C, 1, 1)
    assert jnp.allclose(y, y_ref, rtol=1e-5, atol=1e-6), "mismatch vs reference"

    print("KERNEL_OK")
</pallas_src>

<mosaic_0001>
module attributes {stable_mosaic.version = 11 : i64} {
  func.func @_gem_kernel(%arg0: i32, %arg1: memref<1xf32, #tpu.memory_space<smem>>, %arg2: memref<8x256xf32, #tpu.memory_space<vmem>>, %arg3: memref<8x1xf32, #tpu.memory_space<vmem>>) attributes {dimension_semantics = [#tpu.dimension_semantics<parallel>], iteration_bounds = array<i64: 1>, scalar_prefetch = 1 : i64, scratch_operands = 0 : i64, tpu.core_type = #tpu.core_type<tc>, window_params = [{transform_indices = @transform_0, window_bounds = array<i64: 8, 256>}, {transform_indices = @transform_1, window_bounds = array<i64: 8, 1>}]} {
    %c0 = arith.constant 0 : index
    %0 = memref.load %arg1[%c0] : memref<1xf32, #tpu.memory_space<smem>>
    %cst = arith.constant 1.000000e+00 : f32
    %1 = arith.divf %cst, %0 : f32
    %c0_0 = arith.constant 0 : index
    %c0_1 = arith.constant 0 : index
    %2 = vector.load %arg2[%c0_0, %c0_1] : memref<8x256xf32, #tpu.memory_space<vmem>>, vector<8x256xf32>
    %cst_2 = arith.constant 9.99999997E-7 : f32
    %3 = vector.broadcast %cst_2 : f32 to vector<8x256xf32>
    %4 = arith.maximumf %2, %3 : vector<8x256xf32>
    %5 = math.log %4 : vector<8x256xf32>
    %6 = vector.broadcast %0 : f32 to vector<8x256xf32>
    %7 = arith.mulf %6, %5 : vector<8x256xf32>
    %8 = math.exp %7 : vector<8x256xf32>
    %cst_3 = arith.constant dense<0.000000e+00> : vector<8xf32>
    %9 = vector.multi_reduction <add>, %8, %cst_3 [1] : vector<8x256xf32> to vector<8xf32>
    %10 = vector.shape_cast %9 : vector<8xf32> to vector<8x1xf32>
    %cst_4 = arith.constant 3.906250e-03 : f32
    %11 = vector.broadcast %cst_4 : f32 to vector<8x1xf32>
    %12 = arith.mulf %10, %11 : vector<8x1xf32>
    %13 = math.log %12 : vector<8x1xf32>
    %14 = vector.broadcast %1 : f32 to vector<8x1xf32>
    %15 = arith.mulf %13, %14 : vector<8x1xf32>
    %16 = math.exp %15 : vector<8x1xf32>
    %c0_5 = arith.constant 0 : index
    %c0_6 = arith.constant 0 : index
    %17 = vector.load %arg3[%c0_5, %c0_6] : memref<8x1xf32, #tpu.memory_space<vmem>>, vector<8x1xf32>
    tpu.vector_store %arg3[%c0_5, %c0_6], %16 {strides = array<i32>} : memref<8x1xf32, #tpu.memory_space<vmem>>, vector<8x1xf32>,
    return
  }
  func.func @transform_0(%arg0: i32, %arg1: memref<1xf32, #tpu.memory_space<smem>>) -> (i32, i32) {
    %c0_i32 = arith.constant 0 : i32
    %c0_i32_0 = arith.constant 0 : i32
    return %arg0, %c0_i32 : i32, i32
  }
  func.func @transform_1(%arg0: i32, %arg1: memref<1xf32, #tpu.memory_space<smem>>) -> (i32, i32) {
    %c0_i32 = arith.constant 0 : i32
    %c0_i32_0 = arith.constant 0 : i32
    return %arg0, %c0_i32 : i32, i32
  }
}

</mosaic_0001>

<bundles_post_ra>
// kernel: tpu_custom_call.1
= control target key start
LH: loop header
LB: loop body
LE: loop exit
PB: predicated region body
PF: predicated region fallthrough
CT: control target
= control target key end

     0   :  { %8 = vsyncpa [#allocation5], 0  ;;  %s97_s9 = smov [#allocation4]   ;;  %s122_s0 = inlined_call_operand.<no memory space> [shape: f32[1], index: 0, kind: input, shape index: {}]   ;;  %s123_s1 = inlined_call_operand.hbm [shape: f32[8,256], index: 1, kind: input, shape index: {}]   ;;  %s124_s2 = inlined_call_operand.vmem [shape: f32[8,1], index: 2, kind: output, shape index: {}]  }
   0x1   :  { %s15_s10 = sshll.u32 %s97_s9, 4  ;;  %s16_s10 = int_to_ptr.vmem [resolvable:$true] %s15_s10 }
   0x2   :  { %s83_s11 = scalar_lea.vmem %s16_s10, 256  ;;  %p88_p1 = scmp.lt.s32.totalorder %s16_s10, %s16_s10 }
   0x3   :  { %p84_p0 = scmp.ne.s32.totalorder %s16_s10, %s83_s11  ;;  %p89_p2 = scmp.lt.s32.totalorder %s83_s11, %s83_s11 }
   0x5   :  { %p90_p3 = por %p89_p2, %p88_p1 }
   0x7   :  { %p91_p4 = pnand %p90_p3, %p84_p0 }
   0x9   :  { %94 = shalt.err (!%p91_p4)
}
   0xa   :  { %18 = dma.hbm_to_vmem [thread:$0]  %s123_s1, 256, %s16_s10, [#allocation5]  }
   0xb   :  { %95 = dma.done.wait [#allocation5], 256  }
   0xc   :  { %96 = vsyncadd [#allocation5], 4294967040  ;;  %v23_v0 = vstv %s122_s0  ;;  %v26_v1 = vld [vmem:[#allocation4] sm:$0xff]  ;;  %v27_v2 = vld [vmem:[#allocation4 + $0x8] sm:$0xff]  ;;  %vm51_vm0 = vcmask 7168  }
   0xd   :  { %61 = vrcp.f32 %v23_v0  ;;  %v28_v3 = vmax.f32 %v26_v1, 1e-06  ;;  %v29_v4 = vmax.f32 %v27_v2, 1e-06 }
   0xf   :  { %63 = vlog2.f32 %v28_v3 }
  0x10   :  { %65 = vlog2.f32 %v29_v4 }
  0x1a   :  { %v62_v5 = vpop.eup %61 }
  0x1b   :  { %58 = vpush %v62_v5 }
  0x1c   :  { %v64_v6 = vpop.eup %63 }
  0x1d   :  { %v66_v7 = vpop.eup %65  ;;  %v31_v8 = vmul.f32 0.6931472, %v64_v6 }
  0x1e   :  { %v33_v9 = vmul.f32 0.6931472, %v66_v7 }
  0x1f   :  { %v35_v10 = vmul.f32 %v31_v8, %v23_v0 }
  0x20   :  { %v36_v11 = vmul.f32 %v33_v9, %v23_v0 }
  0x21   :  { %v37_v12 = vmul.f32 1.442695, %v35_v10 }
  0x22   :  { %v39_v13 = vmul.f32 1.442695, %v36_v11 }
  0x23   :  { %67 = vpow2.f32 %v37_v12 }
  0x24   :  { %69 = vpow2.f32 %v39_v13 }
  0x30   :  { %v68_v14 = vpop.eup %67 }
  0x31   :  { %v70_v15 = vpop.eup %69 }
  0x32   :  { %v41_v16 = vadd.f32 %v70_v15, %v68_v14 }
  0x34   :  { %42 = vadd.xlane.f32.xlu0 %v41_v16 }
  0x4c   :  { %s59_s0 = spop %58 }
  0x4d   :  { %v47_v20 = vstv %s59_s0 }
  0xbd   :  { %v43_v17 = vpop.xlane.xlu0 %42 }
  0xbe   :  { %v44_v18 = vmul.f32 0.00390625, %v43_v17 }
  0xc0   :  { %71 = vlog2.f32 %v44_v18 }
  0xcd   :  { %v72_v19 = vpop.eup %71 }
  0xce   :  { %v46_v21 = vmul.f32 0.6931472, %v72_v19 }
  0xd0   :  { %v48_v22 = vmul.f32 %v47_v20, %v46_v21 }
  0xd2   :  { %v49_v23 = vmul.f32 1.442695, %v48_v22 }
  0xd4   :  { %73 = vpow2.f32 %v49_v23 }
  0xe1   :  { %v74_v24 = vpop.eup %73 }
  0xe2   :  { %52 = vst.msk [vmem:[%s124_s2] sm:$0xff] %vm51_vm0, %v74_v24 }
  0xe3   :  { %57 = vsyncpa [#allocation5], 1 }

</bundles_post_ra>
